<compile_context>
chip_gen: v5e
topology: v5e:2x2
jax: 0.10.0
libtpu: 0.0.40
codegen_flags: <defaults>
</compile_context>

<pallas_src>
import jax
import jax.numpy as jnp
import numpy as np
from jax.experimental import pallas as pl
from jax.experimental.pallas import tpu as pltpu

_LANE = 128
_TB_MAX = 1024  # lane-tile cap: keeps (n_npl, TB) activations within the vreg file


def _round_up(x, m):
    return ((x + m - 1) // m) * m


def _softplus_power(y):
    # PyTorch nn.Softplus default (beta=1, threshold=20) followed by **1.1,
    # folded into a single f32 transcendental chain on the EUP slot.
    sp = jnp.where(y > 20.0, y, jnp.log1p(jnp.exp(jnp.minimum(y, 20.0))))
    return jnp.exp(1.1 * jnp.log(sp))


def _make_fused_kernel(n_layers, n_npl, n_inputs):
    """Fused ICNN forward, batch-in-lanes layout.

    Ref order: (x_ref, <w0,b0, w1,b1, ...>, o_ref[, cat_ref])
      x_ref   : (n_inputs, TB)   batch on the lane axis
      w_i     : (Dout_i, Din_i)  original PyTorch layout (no transpose needed)
      b_i     : (Dout_i, 1)      broadcasts along lanes
      o_ref   : (n_outputs, TB)
      cat_ref : (n_npl + n_inputs, TB) VMEM scratch holding [h; x]
                (only present when n_layers >= 1).
    """
    if n_layers == 0:
        def kernel0(x_ref, w_ref, b_ref, o_ref):
            y = jnp.dot(w_ref[...], x_ref[...],
                        preferred_element_type=jnp.float32) + b_ref[...]
            o_ref[...] = y.astype(o_ref.dtype)
        return kernel0

    def kernel(*refs):
        x_ref = refs[0]
        o_ref = refs[-2]
        cat_ref = refs[-1]
        p = refs[1:-2]

        x = x_ref[...]                                     # (n_in, TB)
        # raw-input rows of the concat buffer: written once per batch tile
        cat_ref[n_npl:n_npl + n_inputs, :] = x

        # layer 0: n_inputs -> n_npl
        h = _softplus_power(
            jnp.dot(p[0][...], x, preferred_element_type=jnp.float32)
            + p[1][...])

        idx = 2
        # hidden layers: W @ [h; x] + b  (single fused K = n_npl + n_in dot)
        for _ in range(n_layers - 1):
            w_ref, b_ref = p[idx], p[idx + 1]
            idx += 2
            cat_ref[0:n_npl, :] = h
            y = jnp.dot(w_ref[...], cat_ref[...],
                        preferred_element_type=jnp.float32) + b_ref[...]
            h = _softplus_power(y)

        # output layer (no activation)
        w_ref, b_ref = p[idx], p[idx + 1]
        cat_ref[0:n_npl, :] = h
        y = jnp.dot(w_ref[...], cat_ref[...],
                    preferred_element_type=jnp.float32) + b_ref[...]
        o_ref[...] = y.astype(o_ref.dtype)

    return kernel


def init_icnn_params(key, n_inputs, n_outputs, n_layers, n_npl):
    """PyTorch-layout params (out_features, in_features), nn.Linear-style init."""
    shapes = []
    if n_layers == 0:
        shapes.append((n_outputs, n_inputs))
    else:
        shapes.append((n_npl, n_inputs))
        for _ in range(n_layers - 1):
            shapes.append((n_npl, n_npl + n_inputs))
        shapes.append((n_outputs, n_npl + n_inputs))

    params = []
    for (dout, din) in shapes:
        key, kw, kb = jax.random.split(key, 3)
        bound = 1.0 / (din ** 0.5)
        w = jax.random.uniform(kw, (dout, din), jnp.float32, -bound, bound)
        b = jax.random.uniform(kb, (dout,), jnp.float32, -bound, bound)
        params.append((w, b))
    return params


def prepare_icnn_params(params):
    """One-time prep for the batch-in-lanes kernel: weights stay in PyTorch
    (Dout, Din) layout (kernel computes W @ lhs); biases become (Dout, 1)
    columns so they broadcast along the batch/lane axis."""
    flat = []
    for (w, b) in params:
        flat += [jnp.asarray(w, jnp.float32),
                 jnp.asarray(b, jnp.float32).reshape(-1, 1)]
    n_layers = len(params) - 1    # number of activated layers (== PyTorch n_layers)
    return n_layers, flat


def icnn_forward(x, prepared):
    """Fused forward: one pallas_call, batch on the lane axis, params VMEM-resident."""
    n_layers, flat = prepared
    B, n_in = x.shape
    n_out = flat[-1].shape[0]
    n_npl = flat[0].shape[0] if n_layers > 0 else n_out

    # --- batch tiling: batch lives on the 128-lane axis ----------------------
    B_lane = _round_up(B, _LANE)
    if B_lane <= 2 * _LANE:
        TB = B_lane                                  # tiny batch: single grid step
    else:
        # >=2 grid steps (feeds both TensorCores on v7x), capped for vreg pressure
        TB = min(_TB_MAX, _round_up(pl.cdiv(B_lane, 2), _LANE))
    B_pad = _round_up(B_lane, TB)
    grid = (B_pad // TB,)

    # pad + transpose in the wrapper (layout plumbing, not in-kernel work);
    # padded rows are zeros -> flow through softplus without producing NaN/inf.
    x32 = x.astype(jnp.float32)
    if B_pad != B:
        x32 = jnp.pad(x32, ((0, B_pad - B), (0, 0)))
    x_t = x32.T                                      # (n_in, B_pad)

    in_specs = [pl.BlockSpec((n_in, TB), lambda i: (0, i))]
    for a in flat:
        in_specs.append(pl.BlockSpec(a.shape, lambda i: (0, 0)))   # VMEM-resident
    out_spec = pl.BlockSpec((n_out, TB), lambda i: (0, i))

    scratch_shapes = []
    cat_rows = 0
    if n_layers >= 1:
        cat_rows = n_npl + n_in
        scratch_shapes = [pltpu.VMEM((cat_rows, TB), jnp.float32)]

    # VMEM budget from the real footprint (+ headroom), well under 32 MiB.
    param_bytes = sum(int(a.size) * 4 for a in flat)
    io_bytes = 2 * (_round_up(n_in, 8) + _round_up(n_out, 8)) * TB * 4
    scratch_bytes = _round_up(max(cat_rows, 1), 8) * TB * 4
    vmem_bytes = min(32 << 20,
                     2 * param_bytes + io_bytes + scratch_bytes + (8 << 20))

    kernel = _make_fused_kernel(n_layers, n_npl, n_in)
    out_t = pl.pallas_call(
        kernel,
        out_shape=jax.ShapeDtypeStruct((n_out, B_pad), jnp.float32),
        grid=grid,
        in_specs=in_specs,
        out_specs=out_spec,
        scratch_shapes=scratch_shapes,
        compiler_params=pltpu.CompilerParams(
            dimension_semantics=("parallel",),
            vmem_limit_bytes=vmem_bytes,
        ),
    )(x_t, *flat)

    out = out_t.T                                    # (B_pad, n_out)
    if B_pad != B:
        out = out[:B]
    return out.astype(x.dtype)


def icnn_forward_ref_np(x, params):
    """Exact float64 numpy reference mirroring the PyTorch forward."""
    def softplus_power(y):
        sp = np.where(y > 20.0, y, np.log1p(np.exp(np.minimum(y, 20.0))))
        return sp ** 1.1

    x = np.asarray(x, np.float64)
    inps = x
    out = x
    n = len(params)
    for i in range(n - 1):
        if i > 0:
            out = np.concatenate([out, inps], axis=1)
        w, b = np.asarray(params[i][0], np.float64), np.asarray(params[i][1], np.float64)
        out = softplus_power(out @ w.T + b)
    if n != 1:
        out = np.concatenate([out, inps], axis=1)
    w, b = np.asarray(params[-1][0], np.float64), np.asarray(params[-1][1], np.float64)
    return out @ w.T + b


# TODO(synk): make_convex / project / save / load are weight-mutation & file-I/O
# utilities, not part of the forward pass, so they are not implemented as kernels.

if __name__ == "__main__":
    key = jax.random.PRNGKey(0)

    def check(batch, n_inputs, n_outputs, n_layers, n_npl, k):
        kx, kp = jax.random.split(k)
        x = jax.random.normal(kx, (batch, n_inputs), jnp.float32)
        params = init_icnn_params(kp, n_inputs, n_outputs, n_layers, n_npl)
        prepared = prepare_icnn_params(params)
        out = jax.block_until_ready(icnn_forward(x, prepared))
        ref = icnn_forward_ref_np(np.asarray(x), params)
        assert out.shape == (batch, n_outputs), (out.shape, (batch, n_outputs))
        assert np.allclose(np.asarray(out), ref, atol=1e-4, rtol=1e-4), \
            float(np.max(np.abs(np.asarray(out) - ref)))

    # Config 1: ICNN(n_inputs=4, n_outputs=2, n_layers=2, n_npl=32), batch=8
    key, k1 = jax.random.split(key)
    check(batch=8, n_inputs=4, n_outputs=2, n_layers=2, n_npl=32, k=k1)

    # Config 2: degenerate n_layers=0 path (single Linear, no activation)
    key, k2 = jax.random.split(key)
    check(batch=8, n_inputs=4, n_outputs=3, n_layers=0, n_npl=32, k=k2)

    # Config 3: non-aligned batch (padding) + multi-step grid, deeper net
    key, k3 = jax.random.split(key)
    check(batch=300, n_inputs=5, n_outputs=1, n_layers=3, n_npl=32, k=k3)

    print("KERNEL_OK")
</pallas_src>

<mosaic_0001>
module attributes {stable_mosaic.version = 11 : i64} {
  func.func @kernel(%arg0: i32, %arg1: memref<4x128xf32, #tpu.memory_space<vmem>>, %arg2: memref<32x4xf32, #tpu.memory_space<vmem>>, %arg3: memref<32x1xf32, #tpu.memory_space<vmem>>, %arg4: memref<32x36xf32, #tpu.memory_space<vmem>>, %arg5: memref<32x1xf32, #tpu.memory_space<vmem>>, %arg6: memref<2x36xf32, #tpu.memory_space<vmem>>, %arg7: memref<2x1xf32, #tpu.memory_space<vmem>>, %arg8: memref<2x128xf32, #tpu.memory_space<vmem>>, %arg9: memref<36x128xf32, #tpu.memory_space<vmem>>) attributes {dimension_semantics = [#tpu.dimension_semantics<parallel>], iteration_bounds = array<i64: 1>, scalar_prefetch = 0 : i64, scratch_operands = 1 : i64, tpu.core_type = #tpu.core_type<tc>, window_params = [{transform_indices = @transform_0, window_bounds = array<i64: 4, 128>}, {pipeline_mode = #tpu.pipeline_mode<synchronous>, transform_indices = @transform_1, window_bounds = array<i64: 32, 4>}, {pipeline_mode = #tpu.pipeline_mode<synchronous>, transform_indices = @transform_2, window_bounds = array<i64: 32, 1>}, {pipeline_mode = #tpu.pipeline_mode<synchronous>, transform_indices = @transform_3, window_bounds = array<i64: 32, 36>}, {pipeline_mode = #tpu.pipeline_mode<synchronous>, transform_indices = @transform_4, window_bounds = array<i64: 32, 1>}, {pipeline_mode = #tpu.pipeline_mode<synchronous>, transform_indices = @transform_5, window_bounds = array<i64: 2, 36>}, {pipeline_mode = #tpu.pipeline_mode<synchronous>, transform_indices = @transform_6, window_bounds = array<i64: 2, 1>}, {transform_indices = @transform_7, window_bounds = array<i64: 2, 128>}]} {
    %c0 = arith.constant 0 : index
    %c0_0 = arith.constant 0 : index
    %0 = vector.load %arg1[%c0, %c0_0] : memref<4x128xf32, #tpu.memory_space<vmem>>, vector<4x128xf32>
    %c32 = arith.constant 32 : index
    %c0_1 = arith.constant 0 : index
    %1 = vector.load %arg9[%c32, %c0_1] : memref<36x128xf32, #tpu.memory_space<vmem>>, vector<4x128xf32>
    tpu.vector_store %arg9[%c32, %c0_1], %0 {strides = array<i32>} : memref<36x128xf32, #tpu.memory_space<vmem>>, vector<4x128xf32>,
    %c0_2 = arith.constant 0 : index
    %c0_3 = arith.constant 0 : index
    %2 = vector.load %arg2[%c0_2, %c0_3] : memref<32x4xf32, #tpu.memory_space<vmem>>, vector<32x4xf32>
    %cst = arith.constant dense<0.000000e+00> : vector<32x128xf32>
    %3 = tpu.matmul %2, %0, %cst {dimension_numbers = #tpu.dot_dimension_numbers<[1], [0], [0], [1], [0, 0, 1, 1], [], []>} : vector<32x4xf32>, vector<4x128xf32>, vector<32x128xf32> -> vector<32x128xf32>
    %c0_4 = arith.constant 0 : index
    %c0_5 = arith.constant 0 : index
    %4 = vector.load %arg3[%c0_4, %c0_5] : memref<32x1xf32, #tpu.memory_space<vmem>>, vector<32x1xf32>
    %5 = vector.broadcast %4 : vector<32x1xf32> to vector<32x128xf32>
    %6 = arith.addf %3, %5 : vector<32x128xf32>
    %cst_6 = arith.constant 2.000000e+01 : f32
    %7 = vector.broadcast %cst_6 : f32 to vector<32x128xf32>
    %8 = arith.cmpf ogt, %6, %7 : vector<32x128xf32>
    %cst_7 = arith.constant 2.000000e+01 : f32
    %9 = vector.broadcast %cst_7 : f32 to vector<32x128xf32>
    %10 = arith.minimumf %6, %9 : vector<32x128xf32>
    %11 = math.exp %10 : vector<32x128xf32>
    %12 = math.log1p %11 : vector<32x128xf32>
    %13 = arith.select %8, %6, %12 : vector<32x128xi1>, vector<32x128xf32>
    %14 = math.log %13 : vector<32x128xf32>
    %cst_8 = arith.constant 1.100000e+00 : f32
    %15 = vector.broadcast %cst_8 : f32 to vector<32x128xf32>
    %16 = arith.mulf %15, %14 : vector<32x128xf32>
    %17 = math.exp %16 : vector<32x128xf32>
    %c0_9 = arith.constant 0 : index
    %c0_10 = arith.constant 0 : index
    %18 = vector.load %arg9[%c0_9, %c0_10] : memref<36x128xf32, #tpu.memory_space<vmem>>, vector<32x128xf32>
    tpu.vector_store %arg9[%c0_9, %c0_10], %17 {strides = array<i32>} : memref<36x128xf32, #tpu.memory_space<vmem>>, vector<32x128xf32>,
    %c0_11 = arith.constant 0 : index
    %c0_12 = arith.constant 0 : index
    %19 = vector.load %arg4[%c0_11, %c0_12] : memref<32x36xf32, #tpu.memory_space<vmem>>, vector<32x36xf32>
    %c0_13 = arith.constant 0 : index
    %c0_14 = arith.constant 0 : index
    %20 = vector.load %arg9[%c0_13, %c0_14] : memref<36x128xf32, #tpu.memory_space<vmem>>, vector<36x128xf32>
    %cst_15 = arith.constant dense<0.000000e+00> : vector<32x128xf32>
    %21 = tpu.matmul %19, %20, %cst_15 {dimension_numbers = #tpu.dot_dimension_numbers<[1], [0], [0], [1], [0, 0, 1, 1], [], []>} : vector<32x36xf32>, vector<36x128xf32>, vector<32x128xf32> -> vector<32x128xf32>
    %c0_16 = arith.constant 0 : index
    %c0_17 = arith.constant 0 : index
    %22 = vector.load %arg5[%c0_16, %c0_17] : memref<32x1xf32, #tpu.memory_space<vmem>>, vector<32x1xf32>
    %23 = vector.broadcast %22 : vector<32x1xf32> to vector<32x128xf32>
    %24 = arith.addf %21, %23 : vector<32x128xf32>
    %cst_18 = arith.constant 2.000000e+01 : f32
    %25 = vector.broadcast %cst_18 : f32 to vector<32x128xf32>
    %26 = arith.cmpf ogt, %24, %25 : vector<32x128xf32>
    %cst_19 = arith.constant 2.000000e+01 : f32
    %27 = vector.broadcast %cst_19 : f32 to vector<32x128xf32>
    %28 = arith.minimumf %24, %27 : vector<32x128xf32>
    %29 = math.exp %28 : vector<32x128xf32>
    %30 = math.log1p %29 : vector<32x128xf32>
    %31 = arith.select %26, %24, %30 : vector<32x128xi1>, vector<32x128xf32>
    %32 = math.log %31 : vector<32x128xf32>
    %cst_20 = arith.constant 1.100000e+00 : f32
    %33 = vector.broadcast %cst_20 : f32 to vector<32x128xf32>
    %34 = arith.mulf %33, %32 : vector<32x128xf32>
    %35 = math.exp %34 : vector<32x128xf32>
    %c0_21 = arith.constant 0 : index
    %c0_22 = arith.constant 0 : index
    %36 = vector.load %arg9[%c0_21, %c0_22] : memref<36x128xf32, #tpu.memory_space<vmem>>, vector<32x128xf32>
    tpu.vector_store %arg9[%c0_21, %c0_22], %35 {strides = array<i32>} : memref<36x128xf32, #tpu.memory_space<vmem>>, vector<32x128xf32>,
    %c0_23 = arith.constant 0 : index
    %c0_24 = arith.constant 0 : index
    %37 = vector.load %arg6[%c0_23, %c0_24] : memref<2x36xf32, #tpu.memory_space<vmem>>, vector<2x36xf32>
    %c0_25 = arith.constant 0 : index
    %c0_26 = arith.constant 0 : index
    %38 = vector.load %arg9[%c0_25, %c0_26] : memref<36x128xf32, #tpu.memory_space<vmem>>, vector<36x128xf32>
    %cst_27 = arith.constant dense<0.000000e+00> : vector<2x128xf32>
    %39 = tpu.matmul %37, %38, %cst_27 {dimension_numbers = #tpu.dot_dimension_numbers<[1], [0], [0], [1], [0, 0, 1, 1], [], []>} : vector<2x36xf32>, vector<36x128xf32>, vector<2x128xf32> -> vector<2x128xf32>
    %c0_28 = arith.constant 0 : index
    %c0_29 = arith.constant 0 : index
    %40 = vector.load %arg7[%c0_28, %c0_29] : memref<2x1xf32, #tpu.memory_space<vmem>>, vector<2x1xf32>
    %41 = vector.broadcast %40 : vector<2x1xf32> to vector<2x128xf32>
    %42 = arith.addf %39, %41 : vector<2x128xf32>
    %c0_30 = arith.constant 0 : index
    %c0_31 = arith.constant 0 : index
    %43 = vector.load %arg8[%c0_30, %c0_31] : memref<2x128xf32, #tpu.memory_space<vmem>>, vector<2x128xf32>
    tpu.vector_store %arg8[%c0_30, %c0_31], %42 {strides = array<i32>} : memref<2x128xf32, #tpu.memory_space<vmem>>, vector<2x128xf32>,
    return
  }
  func.func @transform_0(%arg0: i32) -> (i32, i32) {
    %c0_i32 = arith.constant 0 : i32
    %c0_i32_0 = arith.constant 0 : i32
    return %c0_i32, %arg0 : i32, i32
  }
  func.func @transform_1(%arg0: i32) -> (i32, i32) {
    %c0_i32 = arith.constant 0 : i32
    %c0_i32_0 = arith.constant 0 : i32
    %c0_i32_1 = arith.constant 0 : i32
    return %c0_i32, %c0_i32_0 : i32, i32
  }
  func.func @transform_2(%arg0: i32) -> (i32, i32) {
    %c0_i32 = arith.constant 0 : i32
    %c0_i32_0 = arith.constant 0 : i32
    %c0_i32_1 = arith.constant 0 : i32
    return %c0_i32, %c0_i32_0 : i32, i32
  }
  func.func @transform_3(%arg0: i32) -> (i32, i32) {
    %c0_i32 = arith.constant 0 : i32
    %c0_i32_0 = arith.constant 0 : i32
    %c0_i32_1 = arith.constant 0 : i32
    return %c0_i32, %c0_i32_0 : i32, i32
  }
  func.func @transform_4(%arg0: i32) -> (i32, i32) {
    %c0_i32 = arith.constant 0 : i32
    %c0_i32_0 = arith.constant 0 : i32
    %c0_i32_1 = arith.constant 0 : i32
    return %c0_i32, %c0_i32_0 : i32, i32
  }
  func.func @transform_5(%arg0: i32) -> (i32, i32) {
    %c0_i32 = arith.constant 0 : i32
    %c0_i32_0 = arith.constant 0 : i32
    %c0_i32_1 = arith.constant 0 : i32
    return %c0_i32, %c0_i32_0 : i32, i32
  }
  func.func @transform_6(%arg0: i32) -> (i32, i32) {
    %c0_i32 = arith.constant 0 : i32
    %c0_i32_0 = arith.constant 0 : i32
    %c0_i32_1 = arith.constant 0 : i32
    return %c0_i32, %c0_i32_0 : i32, i32
  }
  func.func @transform_7(%arg0: i32) -> (i32, i32) {
    %c0_i32 = arith.constant 0 : i32
    %c0_i32_0 = arith.constant 0 : i32
    return %c0_i32, %arg0 : i32, i32
  }
}

</mosaic_0001>

<bundles_post_ra>
// kernel: tpu_custom_call.1
= control target key start
LH: loop header
LB: loop body
LE: loop exit
PB: predicated region body
PF: predicated region fallthrough
CT: control target
= control target key end

     0   :  { %vm70_vm0 = vcmask 1043456   ;;  %vm57_vm1 = vcmask 31744   ;;  %v509_v5 = vmov 0   ;;  %s640_s0 = inlined_call_operand.vmem [shape: f32[4,128], index: 0, kind: input, shape index: {}]   ;;  %s641_s1 = inlined_call_operand.vmem [shape: f32[32,4], index: 1, kind: input, shape index: {}]   ;;  %s642_s2 = inlined_call_operand.vmem [shape: f32[32,1], index: 2, kind: input, shape index: {}]   ;;  %s643_s3 = inlined_call_operand.vmem [shape: f32[32,36], index: 3, kind: input, shape index: {}]   ;;  %s644_s4 = inlined_call_operand.vmem [shape: f32[32,1], index: 4, kind: input, shape index: {}]   ;;  %s645_s5 = inlined_call_operand.vmem [shape: f32[2,36], index: 5, kind: input, shape index: {}]   ;;  %s646_s6 = inlined_call_operand.vmem [shape: f32[2,1], index: 6, kind: input, shape index: {}]   ;;  %s647_s7 = inlined_call_operand.hbm [shape: f32[2,128], index: 7, kind: output, shape index: {}]  }
   0x1   :  { %v27_v0 = vld [vmem:[%s640_s0] sm:$0xf]  ;;  %v32_v2 = vld [vmem:[%s641_s1 + $0x18] sm:$0xff]  ;;  %v34_v4 = vld [vmem:[%s642_s2 + $0x8] sm:$0xff]  ;;  %417 = vset.pattern.permute.xlu1 %v509_v5  ;;  %416 = vset.pattern.permute.xlu0 %v509_v5 }
   0x2   :  { %v29_v1 = vld [vmem:[%s641_s1] sm:$0xff]  ;;  %28 = vst [vmem:[#allocation2] sm:$0xf] %v27_v0  ;;  %396 = vmatpush.msk.msra.mxu0 %vm70_vm0, %v27_v0  ;;  %408 = vmatpush.msk.msra.mxu2 %vm70_vm0, %v27_v0  ;;  %v36_v3 = vld [vmem:[%s642_s2 + $0x18] sm:$0xff] }
   0x3   :  { %397 = vmatmul.msk.f32.vlgmr.msra.gmra.mxu0 %vm57_vm1, %v29_v1  ;;  %400 = vmatmul.msk.f32.vlgmr.msra.gmra.mxu2 %vm57_vm1, %v32_v2 }
   0x4   :  { %12 = vsyncpa [#allocation4], 0  ;;  %54 = vperm.xlu0 %416, %v36_v3   ;;  %44 = vperm.xlu1 %417, %v34_v4   ;;  %v30_v6 = vld [vmem:[%s641_s1 + $0x8] sm:$0xff]  ;;  %v35_v7 = vld [vmem:[%s642_s2 + $0x10] sm:$0xff]  ;;  %vm216_vm10 = vcmask 293888   ;;  %s510_s9 = smov [#allocation3]  }
   0x5   :  { %418 = vset.pattern.permute.xlu2 %v509_v5  ;;  %v33_v8 = vld [vmem:[%s642_s2] sm:$0xff]  ;;  %v31_v9 = vld [vmem:[%s641_s1 + $0x10] sm:$0xff]  ;;  %v193_v10 = vld [vmem:[%s644_s4 + $0x8] sm:$0xff]  ;;  %s385_s10 = sshll.u32 %s510_s9, 4  ;;  %s387_s13 = sshll.u32 %s647_s7, 4  ;;  %s386_s10 = int_to_ptr.vmem [resolvable:$true] %s385_s10  ;;  %s388_s13 = int_to_ptr.hbm [resolvable:$true] %s387_s13 }
   0x6   :  { %v192_v11 = vld [vmem:[%s644_s4] sm:$0xff] }
   0x9   :  { %v191_v34 = vld [vmem:[#allocation2] sm:$0xf] }
   0xa   :  { %401 = vmatpush.msk.msra.mxu1 %vm70_vm0, %v191_v34  ;;  %409 = vmatpush.msk.msra.mxu3 %vm70_vm0, %v191_v34  ;;  %v184_v34 = vld [vmem:[%s643_s3 + $0x8] sm:$0xff] }
   0xb   :  { %398 = vmatmul.msk.f32.gmra.mxu0 %vm57_vm1, %v30_v6 }
   0xc   :  { %49 = vperm.xlu0 %416, %v35_v7   ;;  %39 = vperm.xlu1 %417, %v33_v8  }
  0x13   :  { %399 = vmatmul.msk.f32.gmra.mxu0 %vm57_vm1, %v31_v9 }
  0x14   :  { %203 = vperm.xlu0 %416, %v193_v10   ;;  %198 = vperm.xlu1 %417, %v192_v11  }
  0x76   :  { %v45_v12 = vpop.permute.xlu1 %44  ;;  %v55_v18 = vpop.permute.xlu0 %54 }
  0x7e   :  { %v40_v13 = vpop.permute.xlu1 %39  ;;  %v50_v28 = vpop.permute.xlu0 %49 }
  0x80   :  { %v91_v14 = vpop.f32.mrf.mxu0 }
  0x81   :  { %v590_v15 = vadd.f32 %v91_v14, %v40_v13  ;;  %v195_v14 = vld [vmem:[%s644_s4 + $0x18] sm:$0xff] }
  0x82   :  { %213 = vperm.xlu2 %418, %v195_v14  }
  0x83   :  { %v107_v16 = vmin.f32 %v590_v15, 20.0  ;;  %vm103_vm7 = vcmp.gt.f32.partialorder %v590_v15, 20.0 }
  0x85   :  { %v111_v17 = vmul.f32 1.442695, %v107_v16 }
  0x86   :  { %v100_v19 = vpop.f32.mrf.mxu2 }
  0x87   :  { %419 = vpow2.f32 %v111_v17  ;;  %v101_v20 = vadd.f32 %v100_v19, %v55_v18 }
  0x88   :  { %v94_v21 = vpop.f32.mrf.mxu0 }
  0x89   :  { %v110_v22 = vmin.f32 %v101_v20, 20.0  ;;  %v95_v23 = vadd.f32 %v94_v21, %v45_v12  ;;  %vm106_vm2 = vcmp.gt.f32.partialorder %v101_v20, 20.0  ;;  %v194_v21 = vld [vmem:[%s644_s4 + $0x10] sm:$0xff] }
  0x8a   :  { %208 = vperm.xlu2 %418, %v194_v21  }
  0x8b   :  { %v117_v24 = vmul.f32 1.442695, %v110_v22  ;;  %v108_v25 = vmin.f32 %v95_v23, 20.0  ;;  %vm104_vm6 = vcmp.gt.f32.partialorder %v95_v23, 20.0 }
  0x8d   :  { %v420_v26 = vpop.eup %419  ;;  %421 = vpow2.f32 %v117_v24  ;;  %v113_v27 = vmul.f32 1.442695, %v108_v25 }
  0x8e   :  { %v119_v29 = vadd.f32 1.0, %v420_v26  ;;  %v122_v39 = vmul.f32 -0.5, %v420_v26  ;;  %v125_v48 = vand.u32 2147483647, %v420_v26 }
  0x8f   :  { %423 = vpow2.f32 %v113_v27 }
  0x90   :  { %v97_v30 = vpop.f32.mrf.mxu0  ;;  %425 = vlog2.f32 %v119_v29  ;;  %v123_v44 = vadd.f32 1.0, %v122_v39  ;;  %vm126_vm4 = vcmp.lt.f32.partialorder %v125_v48, 0.0004427343 }
  0x91   :  { %v593_v31 = vadd.f32 %v97_v30, %v50_v28  ;;  %v347_v28 = vld [vmem:[%s646_s6] sm:$0x3] }
  0x92   :  { %v124_v55 = vmul.f32 %v420_v26, %v123_v44  ;;  %350 = vperm.xlu2 %418, %v347_v28  }
  0x93   :  { %v422_v32 = vpop.eup %421  ;;  %v109_v33 = vmin.f32 %v593_v31, 20.0  ;;  %vm105_vm9 = vcmp.gt.f32.partialorder %v593_v31, 20.0 }
  0x94   :  { %v146_v35 = vadd.f32 1.0, %v422_v32  ;;  %v149_v37 = vmul.f32 -0.5, %v422_v32  ;;  %v152_v45 = vand.u32 2147483647, %v422_v32 }
  0x95   :  { %v424_v36 = vpop.eup %423  ;;  %v115_v38 = vmul.f32 1.442695, %v109_v33 }
  0x96   :  { %427 = vlog2.f32 %v146_v35  ;;  %v128_v40 = vadd.f32 1.0, %v424_v36  ;;  %v131_v41 = vmul.f32 -0.5, %v424_v36  ;;  %v150_v42 = vadd.f32 1.0, %v149_v37  ;;  %v426_v43 = vpop.eup %425  ;;  %v186_v35 = vld [vmem:[%s643_s3 + $0x18] sm:$0xff]  ;;  %v199_v37 = vpop.permute.xlu1 %198 }
  0x97   :  { %429 = vpow2.f32 %v115_v38  ;;  %v134_v49 = vand.u32 2147483647, %v424_v36  ;;  %v121_v51 = vmul.f32 0.6931472, %v426_v43  ;;  %vm153_vm3 = vcmp.lt.f32.partialorder %v152_v45, 0.0004427343  ;;  %v204_v45 = vpop.permute.xlu0 %203 }
  0x98   :  { %431 = vlog2.f32 %v128_v40  ;;  %v132_v46 = vadd.f32 1.0, %v131_v41  ;;  %v151_v53 = vmul.f32 %v422_v32, %v150_v42  ;;  %v185_v32 = vld [vmem:[%s643_s3 + $0x10] sm:$0xff] }
  0x99   :  { %vm135_vm5 = vcmp.lt.f32.partialorder %v134_v49, 0.0004427343  ;;  %v127_v62 = vsel %vm126_vm4, %v124_v55, %v121_v51 }
  0x9a   :  { %v133_v59 = vmul.f32 %v424_v36, %v132_v46  ;;  %v155_v2 = vsel %vm103_vm7, %v590_v15, %v127_v62 }
  0x9c   :  { %v428_v47 = vpop.eup %427 }
  0x9d   :  { %v430_v50 = vpop.eup %429  ;;  %v148_v52 = vmul.f32 0.6931472, %v428_v47 }
  0x9e   :  { %v432_v54 = vpop.eup %431  ;;  %v137_v56 = vadd.f32 1.0, %v430_v50  ;;  %v140_v60 = vmul.f32 -0.5, %v430_v50  ;;  %v143_v3 = vand.u32 2147483647, %v430_v50 }
  0x9f   :  { %v154_v57 = vsel %vm153_vm3, %v151_v53, %v148_v52  ;;  %v130_v58 = vmul.f32 0.6931472, %v432_v54 }
  0xa0   :  { %v158_v61 = vsel %vm106_vm2, %v101_v20, %v154_v57  ;;  %433 = vlog2.f32 %v137_v56  ;;  %v141_v1 = vadd.f32 1.0, %v140_v60  ;;  %vm144_vm8 = vcmp.lt.f32.partialorder %v143_v3, 0.0004427343 }
  0xa1   :  { %435 = vlog2.f32 %v158_v61  ;;  %v136_v63 = vsel %vm135_vm5, %v133_v59, %v130_v58 }
  0xa2   :  { %v156_v0 = vsel %vm104_vm6, %v95_v23, %v136_v63  ;;  %v142_v7 = vmul.f32 %v430_v50, %v141_v1 }
  0xa3   :  { %437 = vlog2.f32 %v156_v0 }
  0xa4   :  { %439 = vlog2.f32 %v155_v2 }
  0xa6   :  { %v434_v4 = vpop.eup %433 }
  0xa7   :  { %v436_v5 = vpop.eup %435  ;;  %v139_v6 = vmul.f32 0.6931472, %v434_v4 }
  0xa8   :  { %v166_v8 = vmul.f32 0.6931472, %v436_v5 }
  0xa9   :  { %v145_v9 = vsel %vm144_vm8, %v142_v7, %v139_v6  ;;  %v438_v12 = vpop.eup %437 }
  0xaa   :  { %v170_v10 = vmul.f32 1.1, %v166_v8  ;;  %v157_v11 = vsel %vm105_vm9, %v593_v31, %v145_v9  ;;  %v440_v15 = vpop.eup %439  ;;  %v162_v16 = vmul.f32 0.6931472, %v438_v12  ;;  %v183_v31 = vld [vmem:[%s643_s3] sm:$0xff] }
  0xab   :  { %441 = vlog2.f32 %v157_v11  ;;  %v160_v17 = vmul.f32 0.6931472, %v440_v15  ;;  %v346_v12 = vld [vmem:[#allocation2] sm:$0xf] }
  0xac   :  { %v177_v13 = vmul.f32 1.442695, %v170_v10  ;;  %v168_v19 = vmul.f32 1.1, %v162_v16  ;;  %406 = vmatpush.msk.msrb.mxu2 %vm70_vm0, %v346_v12 }
  0xad   :  { %v167_v23 = vmul.f32 1.1, %v160_v17 }
  0xae   :  { %443 = vpow2.f32 %v177_v13  ;;  %v173_v25 = vmul.f32 1.442695, %v168_v19 }
  0xaf   :  { %v171_v27 = vmul.f32 1.442695, %v167_v23 }
  0xb1   :  { %v442_v18 = vpop.eup %441 }
  0xb2   :  { %v164_v20 = vmul.f32 0.6931472, %v442_v18 }
  0xb4   :  { %v444_v22 = vpop.eup %443  ;;  %v169_v24 = vmul.f32 1.1, %v164_v20 }
  0xb5   :  { %244 = vmatpush.msra.mxu1 %v444_v22  ;;  %410 = vmatpush.msra.mxu3 %v444_v22 }
  0xb6   :  { %v175_v26 = vmul.f32 1.442695, %v169_v24 }
  0xb8   :  { %445 = vpow2.f32 %v175_v26 }
  0xb9   :  { %447 = vpow2.f32 %v173_v25 }
  0xba   :  { %449 = vpow2.f32 %v171_v27 }
  0xbe   :  { %v446_v29 = vpop.eup %445 }
  0xbf   :  { %245 = vmatpush.msra.mxu1 %v446_v29  ;;  %411 = vmatpush.msra.mxu3 %v446_v29  ;;  %v448_v30 = vpop.eup %447 }
  0xc0   :  { %v450_v33 = vpop.eup %449 }
  0xc1   :  { %246 = vmatpush.msra.mxu1 %v448_v30  ;;  %412 = vmatpush.msra.mxu3 %v448_v30 }
  0xc3   :  { %247 = vmatpush.msra.mxu1 %v450_v33  ;;  %413 = vmatpush.msra.mxu3 %v450_v33 }
  0xc4   :  { %402 = vmatmul.msk.f32.vlgmr.msra.gmra.mxu1 %vm216_vm10, %v183_v31  ;;  %404 = vmatmul.msk.f32.vlgmr.msra.gmra.mxu3 %vm216_vm10, %v185_v32 }
  0xcc   :  { %403 = vmatmul.msk.f32.gmra.mxu1 %vm216_vm10, %v184_v34  ;;  %405 = vmatmul.msk.f32.gmra.mxu3 %vm216_vm10, %v186_v35 }
  0xdc   :  { %v214_v36 = vpop.permute.xlu2 %213 }
  0xe4   :  { %v209_v42 = vpop.permute.xlu2 %208 }
 0x141   :  { %v249_v38 = vpop.f32.mrf.mxu1 }
 0x142   :  { %v250_v39 = vadd.f32 %v249_v38, %v199_v37 }
 0x144   :  { %v265_v40 = vmin.f32 %v250_v39, 20.0  ;;  %vm261_vm12 = vcmp.gt.f32.partialorder %v250_v39, 20.0 }
 0x146   :  { %v269_v41 = vmul.f32 1.442695, %v265_v40 }
 0x147   :  { %v255_v43 = vpop.f32.mrf.mxu3 }
 0x148   :  { %451 = vpow2.f32 %v269_v41  ;;  %v256_v44 = vadd.f32 %v255_v43, %v209_v42 }
 0x149   :  { %v252_v46 = vpop.f32.mrf.mxu1 }
 0x14a   :  { %v267_v47 = vmin.f32 %v256_v44, 20.0  ;;  %v253_v48 = vadd.f32 %v252_v46, %v204_v45  ;;  %vm263_vm14 = vcmp.gt.f32.partialorder %v256_v44, 20.0 }
 0x14c   :  { %v273_v49 = vmul.f32 1.442695, %v267_v47  ;;  %v266_v50 = vmin.f32 %v253_v48, 20.0  ;;  %vm262_vm1 = vcmp.gt.f32.partialorder %v253_v48, 20.0 }
 0x14e   :  { %v452_v51 = vpop.eup %451  ;;  %453 = vpow2.f32 %v273_v49  ;;  %v271_v52 = vmul.f32 1.442695, %v266_v50 }
 0x14f   :  { %v277_v53 = vadd.f32 1.0, %v452_v51  ;;  %v258_v54 = vpop.f32.mrf.mxu3  ;;  %v280_v55 = vmul.f32 -0.5, %v452_v51  ;;  %v283_v61 = vand.u32 2147483647, %v452_v51 }
 0x150   :  { %455 = vpow2.f32 %v271_v52  ;;  %v627_v56 = vadd.f32 %v258_v54, %v214_v36  ;;  %v351_v54 = vpop.permute.xlu2 %350 }
 0x151   :  { %457 = vlog2.f32 %v277_v53  ;;  %v281_v59 = vadd.f32 1.0, %v280_v55  ;;  %vm284_vm11 = vcmp.lt.f32.partialorder %v283_v61, 0.0004427343  ;;  %v341_v53 = vld [vmem:[%s645_s5] sm:$0x3] }
 0x152   :  { %v268_v57 = vmin.f32 %v627_v56, 20.0  ;;  %vm264_vm2 = vcmp.gt.f32.partialorder %v627_v56, 20.0 }
 0x153   :  { %v282_v4 = vmul.f32 %v452_v51, %v281_v59 }
 0x154   :  { %v454_v58 = vpop.eup %453  ;;  %v275_v60 = vmul.f32 1.442695, %v268_v57 }
 0x155   :  { %v295_v62 = vadd.f32 1.0, %v454_v58  ;;  %v298_v0 = vmul.f32 -0.5, %v454_v58  ;;  %v301_v9 = vand.u32 2147483647, %v454_v58 }
 0x156   :  { %v456_v63 = vpop.eup %455  ;;  %459 = vpow2.f32 %v275_v60 }
 0x157   :  { %v458_v1 = vpop.eup %457  ;;  %461 = vlog2.f32 %v295_v62  ;;  %v286_v2 = vadd.f32 1.0, %v456_v63  ;;  %v289_v5 = vmul.f32 -0.5, %v456_v63  ;;  %v299_v7 = vadd.f32 1.0, %v298_v0 }
 0x158   :  { %v279_v3 = vmul.f32 0.6931472, %v458_v1  ;;  %v292_v14 = vand.u32 2147483647, %v456_v63  ;;  %vm302_vm13 = vcmp.lt.f32.partialorder %v301_v9, 0.0004427343 }
 0x159   :  { %463 = vlog2.f32 %v286_v2  ;;  %v290_v11 = vadd.f32 1.0, %v289_v5  ;;  %v300_v17 = vmul.f32 %v454_v58, %v299_v7 }
 0x15a   :  { %v285_v6 = vsel %vm284_vm11, %v282_v4, %v279_v3  ;;  %vm293_vm15 = vcmp.lt.f32.partialorder %v292_v14, 0.0004427343 }
 0x15b   :  { %v313_v8 = vsel %vm261_vm12, %v250_v39, %v285_v6  ;;  %v291_v22 = vmul.f32 %v456_v63, %v290_v11 }
 0x15c   :  { %v460_v10 = vpop.eup %459  ;;  %465 = vlog2.f32 %v313_v8 }
 0x15d   :  { %v462_v13 = vpop.eup %461  ;;  %v304_v15 = vadd.f32 1.0, %v460_v10  ;;  %v307_v18 = vmul.f32 -0.5, %v460_v10  ;;  %v310_v29 = vand.u32 2147483647, %v460_v10 }
 0x15e   :  { %v297_v16 = vmul.f32 0.6931472, %v462_v13 }
 0x15f   :  { %v464_v19 = vpop.eup %463  ;;  %467 = vlog2.f32 %v304_v15  ;;  %v308_v26 = vadd.f32 1.0, %v307_v18  ;;  %vm311_vm0 = vcmp.lt.f32.partialorder %v310_v29, 0.0004427343 }
 0x160   :  { %v303_v20 = vsel %vm302_vm13, %v300_v17, %v297_v16  ;;  %v288_v21 = vmul.f32 0.6931472, %v464_v19 }
 0x161   :  { %v315_v23 = vsel %vm263_vm14, %v256_v44, %v303_v20  ;;  %v309_v33 = vmul.f32 %v460_v10, %v308_v26 }
 0x162   :  { %v466_v24 = vpop.eup %465  ;;  %469 = vlog2.f32 %v315_v23  ;;  %v294_v25 = vsel %vm293_vm15, %v291_v22, %v288_v21 }
 0x163   :  { %v318_v27 = vmul.f32 0.6931472, %v466_v24  ;;  %v314_v28 = vsel %vm262_vm1, %v253_v48, %v294_v25 }
 0x164   :  { %471 = vlog2.f32 %v314_v28 }
 0x165   :  { %v468_v30 = vpop.eup %467  ;;  %v325_v31 = vmul.f32 1.1, %v318_v27 }
 0x166   :  { %v306_v32 = vmul.f32 0.6931472, %v468_v30 }
 0x167   :  { %v329_v34 = vmul.f32 1.442695, %v325_v31 }
 0x168   :  { %v470_v35 = vpop.eup %469  ;;  %v312_v36 = vsel %vm311_vm0, %v309_v33, %v306_v32 }
 0x169   :  { %473 = vpow2.f32 %v329_v34  ;;  %v322_v37 = vmul.f32 0.6931472, %v470_v35  ;;  %v316_v38 = vsel %vm264_vm2, %v627_v56, %v312_v36 }
 0x16a   :  { %v472_v39 = vpop.eup %471  ;;  %475 = vlog2.f32 %v316_v38 }
 0x16b   :  { %v327_v40 = vmul.f32 1.1, %v322_v37  ;;  %v320_v41 = vmul.f32 0.6931472, %v472_v39 }
 0x16d   :  { %v333_v42 = vmul.f32 1.442695, %v327_v40  ;;  %v326_v43 = vmul.f32 1.1, %v320_v41 }
 0x16f   :  { %v474_v44 = vpop.eup %473  ;;  %477 = vpow2.f32 %v333_v42  ;;  %v331_v45 = vmul.f32 1.442695, %v326_v43 }
 0x170   :  { %v476_v46 = vpop.eup %475 }
 0x171   :  { %479 = vpow2.f32 %v331_v45  ;;  %v324_v47 = vmul.f32 0.6931472, %v476_v46 }
 0x173   :  { %v328_v48 = vmul.f32 1.1, %v324_v47 }
 0x175   :  { %v478_v49 = vpop.eup %477  ;;  %v335_v50 = vmul.f32 1.442695, %v328_v48 }
 0x177   :  { %v480_v51 = vpop.eup %479  ;;  %481 = vpow2.f32 %v335_v50 }
 0x17d   :  { %v482_v52 = vpop.eup %481 }
 0x17e   :  { %371 = vmatpush.msrb.mxu2 %v482_v52 }
 0x180   :  { %372 = vmatpush.msrb.mxu2 %v478_v49 }
 0x182   :  { %373 = vmatpush.msrb.mxu2 %v480_v51 }
 0x184   :  { %374 = vmatpush.msrb.mxu2 %v474_v44 }
 0x185   :  { %407 = vmatmul.msk.f32.vlgmr.msrb.gmra.mxu2 %vm216_vm10, %v341_v53 }
 0x208   :  { %v376_v55 = vpop.f32.mrf.mxu2 }
 0x209   :  { %v377_v56 = vadd.f32 %v376_v55, %v351_v54 }
 0x20b   :  { %379 = vst [vmem:[#allocation3] sm:$0x3] %v377_v56 }
 0x20c   :  { %390 = dma.vmem_to_hbm [thread:$0]  %s386_s10, 32, %s388_s13, [#allocation4]  }
 0x20d   :  { %507 = dma.done.wait [#allocation4], 32  }
 0x20e   :  { %508 = vsyncadd [#allocation4], 4294967264 }
 0x20f   :  { %395 = vsyncpa [#allocation4], 1 }

</bundles_post_ra>
